<compile_context>
chip_gen: v5e
topology: v5e:2x2
jax: 0.10.0
libtpu: 0.0.40
codegen_flags: <defaults>
</compile_context>

<pallas_src>
import functools

import jax
import jax.numpy as jnp
from jax.experimental import pallas as pl
from jax.experimental.pallas import tpu as pltpu


def _round_up(x: int, m: int) -> int:
    return ((x + m - 1) // m) * m


def rff_block_kernel(sigma_ref, freqs_ref, w1_ref, b1_ref, w2_ref, b2_ref, out_ref):
    """One batch tile: RFF embedding + 2-layer MLP (ReLU, ReLU).

    sigma_ref : (Bt, input_dim)       f32
    freqs_ref : (input_dim, rff_dim)  f32  (2*pi already folded in)
    w1_ref    : (2*rff_dim, H1)       f32  (original, unsplit first-layer weight)
    b1_ref    : (1, H1)               f32
    w2_ref    : (H1, H2)              f32
    b2_ref    : (1, H2)               f32
    out_ref   : (Bt, H2)
    """
    sigma = sigma_ref[...].astype(jnp.float32)            # (Bt, I)
    freqs = freqs_ref[...].astype(jnp.float32)            # (I, R), includes 2*pi

    if sigma.shape[-1] == 1:
        # K=1 contraction: outer product -> VPU broadcast multiply, no MXU push.
        table = sigma * freqs                              # (Bt,1)*(1,R) -> (Bt,R)
    else:
        table = jnp.dot(sigma, freqs, preferred_element_type=jnp.float32)

    # Embedding: sin/cos kept explicit (tolerance), fused along lanes so layer 1 is a
    # single MXU dot against the original (2R, H1) weight.
    emb = jnp.concatenate([jnp.sin(table), jnp.cos(table)], axis=-1)   # (Bt, 2R)

    h = jnp.dot(emb, w1_ref[...], preferred_element_type=jnp.float32) + b1_ref[...]
    h = jnp.maximum(h, 0.0)

    o = jnp.dot(h, w2_ref[...], preferred_element_type=jnp.float32) + b2_ref[...]
    o = jnp.maximum(o, 0.0)                                # last_non_linearity = ReLU

    out_ref[...] = o.astype(out_ref.dtype)


@functools.partial(jax.jit, static_argnames=("block_b", "out_dtype"))
def rff_block(sigma, freqs_scaled, w1, b1, w2, b2, *, block_b=2048,
              out_dtype=jnp.float32):
    """sigma: (B, input_dim). freqs_scaled already contains the 2*pi factor;
    w1 is the original (2*rff_dim, H1) first-layer weight (no split)."""
    B, input_dim = sigma.shape
    rff_dim = freqs_scaled.shape[1]
    emb_dim, h1 = w1.shape
    out_dim = w2.shape[1]

    # Batch tile: multiple of 8 sublanes; at least ~4 grid steps for moderate B (so the
    # "parallel" axis actually shards across v7x's 2 TCs); capped at block_b for large B
    # (sweep 2048-4096 at scale; ~8.5 MiB VMEM at 4096, fits every generation).
    bt = max(8, min(block_b, _round_up(pl.cdiv(B, 4), 8)))
    grid = (pl.cdiv(B, bt),)   # partial last block handled (masked stores), no pad/slice

    out = pl.pallas_call(
        rff_block_kernel,
        out_shape=jax.ShapeDtypeStruct((B, out_dim), out_dtype),
        grid=grid,
        in_specs=[
            # batch-tiled input
            pl.BlockSpec((bt, input_dim), lambda i: (i, 0)),
            # weights/biases: same block every step -> VMEM-resident, DMA'd once
            pl.BlockSpec((input_dim, rff_dim), lambda i: (0, 0)),
            pl.BlockSpec((emb_dim, h1), lambda i: (0, 0)),
            pl.BlockSpec((1, h1), lambda i: (0, 0)),
            pl.BlockSpec((h1, out_dim), lambda i: (0, 0)),
            pl.BlockSpec((1, out_dim), lambda i: (0, 0)),
        ],
        out_specs=pl.BlockSpec((bt, out_dim), lambda i: (i, 0)),
        compiler_params=pltpu.CompilerParams(
            dimension_semantics=("parallel",),     # batch tiles shard across v7x's 2 TCs
            vmem_limit_bytes=32 * 1024 * 1024,     # <10 MiB actually used; v7x headroom
        ),
    )(sigma, freqs_scaled, w1, b1, w2, b2)

    return out


def reference(sigma, freqs, w1, b1, w2, b2):
    table = 2.0 * jnp.pi * jnp.einsum("...i,ij->...j", sigma, freqs)
    emb = jnp.concatenate([jnp.sin(table), jnp.cos(table)], axis=-1)
    h = jnp.maximum(emb @ w1 + b1, 0.0)
    return jnp.maximum(h @ w2 + b2, 0.0)


if __name__ == "__main__":
    # Module config (matches RFFBlock(input_dim=1, rff_dim=32, mlp_hidden_dims=[64, 128]))
    B = 8
    input_dim = 1
    rff_dim = 32
    emb_dim = 2 * rff_dim            # 64
    mlp_dims = [emb_dim, 64, 128]    # mlp_hidden_dims with 2*rff_dim prepended

    key = jax.random.PRNGKey(0)
    k_sigma, k_freq, k_w1, k_b1, k_w2, k_b2 = jax.random.split(key, 6)

    # Deterministic parameter init (synthetic, not a checkpoint load).
    sigma = jax.random.uniform(k_sigma, (B, input_dim), dtype=jnp.float32)
    freqs = 16.0 * jax.random.normal(k_freq, (input_dim, rff_dim), dtype=jnp.float32)

    def linear_init(kw, kb, fan_in, fan_out):
        bound = 1.0 / jnp.sqrt(fan_in)
        w = jax.random.uniform(kw, (fan_in, fan_out), minval=-bound, maxval=bound,
                               dtype=jnp.float32)
        b = jax.random.uniform(kb, (1, fan_out), minval=-bound, maxval=bound,
                               dtype=jnp.float32)
        return w, b

    w1, b1 = linear_init(k_w1, k_b1, mlp_dims[0], mlp_dims[1])
    w2, b2 = linear_init(k_w2, k_b2, mlp_dims[1], mlp_dims[2])

    # Parameter-construction-time transform (done once, outside the kernel):
    # fold the constant 2*pi into the frozen frequency weight.
    freqs_scaled = (2.0 * jnp.pi) * freqs

    out = rff_block(sigma, freqs_scaled, w1, b1, w2, b2)
    out = jax.block_until_ready(out)

    ref = reference(sigma, freqs, w1, b1, w2, b2)
    assert out.shape == (B, mlp_dims[-1])
    assert jnp.allclose(out, ref, atol=1e-4, rtol=1e-4), "mismatch vs reference"

    print("KERNEL_OK")
</pallas_src>

<mosaic_0001>
module attributes {stable_mosaic.version = 11 : i64} {
  func.func @rff_block_kernel(%arg0: i32, %arg1: memref<8x1xf32, #tpu.memory_space<vmem>>, %arg2: memref<1x32xf32, #tpu.memory_space<vmem>>, %arg3: memref<64x64xf32, #tpu.memory_space<vmem>>, %arg4: memref<1x64xf32, #tpu.memory_space<vmem>>, %arg5: memref<64x128xf32, #tpu.memory_space<vmem>>, %arg6: memref<1x128xf32, #tpu.memory_space<vmem>>, %arg7: memref<8x128xf32, #tpu.memory_space<vmem>>) attributes {dimension_semantics = [#tpu.dimension_semantics<parallel>], iteration_bounds = array<i64: 1>, scalar_prefetch = 0 : i64, scratch_operands = 0 : i64, tpu.core_type = #tpu.core_type<tc>, window_params = [{transform_indices = @transform_0, window_bounds = array<i64: 8, 1>}, {pipeline_mode = #tpu.pipeline_mode<synchronous>, transform_indices = @transform_1, window_bounds = array<i64: 1, 32>}, {pipeline_mode = #tpu.pipeline_mode<synchronous>, transform_indices = @transform_2, window_bounds = array<i64: 64, 64>}, {pipeline_mode = #tpu.pipeline_mode<synchronous>, transform_indices = @transform_3, window_bounds = array<i64: 1, 64>}, {pipeline_mode = #tpu.pipeline_mode<synchronous>, transform_indices = @transform_4, window_bounds = array<i64: 64, 128>}, {pipeline_mode = #tpu.pipeline_mode<synchronous>, transform_indices = @transform_5, window_bounds = array<i64: 1, 128>}, {transform_indices = @transform_6, window_bounds = array<i64: 8, 128>}]} {
    %c0 = arith.constant 0 : index
    %c0_0 = arith.constant 0 : index
    %0 = vector.load %arg1[%c0, %c0_0] : memref<8x1xf32, #tpu.memory_space<vmem>>, vector<8x1xf32>
    %c0_1 = arith.constant 0 : index
    %c0_2 = arith.constant 0 : index
    %1 = vector.load %arg2[%c0_1, %c0_2] : memref<1x32xf32, #tpu.memory_space<vmem>>, vector<1x32xf32>
    %2 = vector.broadcast %0 : vector<8x1xf32> to vector<8x32xf32>
    %3 = vector.broadcast %1 : vector<1x32xf32> to vector<8x32xf32>
    %4 = arith.mulf %2, %3 : vector<8x32xf32>
    %5 = math.sin %4 : vector<8x32xf32>
    %6 = math.cos %4 : vector<8x32xf32>
    %7 = tpu.concatenate %5, %6 in 1 : vector<8x32xf32>, vector<8x32xf32> -> vector<8x64xf32>
    %c0_3 = arith.constant 0 : index
    %c0_4 = arith.constant 0 : index
    %8 = vector.load %arg3[%c0_3, %c0_4] : memref<64x64xf32, #tpu.memory_space<vmem>>, vector<64x64xf32>
    %cst = arith.constant dense<0.000000e+00> : vector<8x64xf32>
    %9 = tpu.matmul %7, %8, %cst {dimension_numbers = #tpu.dot_dimension_numbers<[1], [0], [0], [1], [0, 0, 1, 1], [], []>} : vector<8x64xf32>, vector<64x64xf32>, vector<8x64xf32> -> vector<8x64xf32>
    %c0_5 = arith.constant 0 : index
    %c0_6 = arith.constant 0 : index
    %10 = vector.load %arg4[%c0_5, %c0_6] : memref<1x64xf32, #tpu.memory_space<vmem>>, vector<1x64xf32>
    %11 = vector.broadcast %10 : vector<1x64xf32> to vector<8x64xf32>
    %12 = arith.addf %9, %11 : vector<8x64xf32>
    %cst_7 = arith.constant 0.000000e+00 : f32
    %13 = vector.broadcast %cst_7 : f32 to vector<8x64xf32>
    %14 = arith.maximumf %12, %13 : vector<8x64xf32>
    %c0_8 = arith.constant 0 : index
    %c0_9 = arith.constant 0 : index
    %15 = vector.load %arg5[%c0_8, %c0_9] : memref<64x128xf32, #tpu.memory_space<vmem>>, vector<64x128xf32>
    %cst_10 = arith.constant dense<0.000000e+00> : vector<8x128xf32>
    %16 = tpu.matmul %14, %15, %cst_10 {dimension_numbers = #tpu.dot_dimension_numbers<[1], [0], [0], [1], [0, 0, 1, 1], [], []>} : vector<8x64xf32>, vector<64x128xf32>, vector<8x128xf32> -> vector<8x128xf32>
    %c0_11 = arith.constant 0 : index
    %c0_12 = arith.constant 0 : index
    %17 = vector.load %arg6[%c0_11, %c0_12] : memref<1x128xf32, #tpu.memory_space<vmem>>, vector<1x128xf32>
    %18 = vector.broadcast %17 : vector<1x128xf32> to vector<8x128xf32>
    %19 = arith.addf %16, %18 : vector<8x128xf32>
    %cst_13 = arith.constant 0.000000e+00 : f32
    %20 = vector.broadcast %cst_13 : f32 to vector<8x128xf32>
    %21 = arith.maximumf %19, %20 : vector<8x128xf32>
    %c0_14 = arith.constant 0 : index
    %c0_15 = arith.constant 0 : index
    %22 = vector.load %arg7[%c0_14, %c0_15] : memref<8x128xf32, #tpu.memory_space<vmem>>, vector<8x128xf32>
    tpu.vector_store %arg7[%c0_14, %c0_15], %21 {strides = array<i32>} : memref<8x128xf32, #tpu.memory_space<vmem>>, vector<8x128xf32>,
    return
  }
  func.func @transform_0(%arg0: i32) -> (i32, i32) {
    %c0_i32 = arith.constant 0 : i32
    %c0_i32_0 = arith.constant 0 : i32
    return %arg0, %c0_i32 : i32, i32
  }
  func.func @transform_1(%arg0: i32) -> (i32, i32) {
    %c0_i32 = arith.constant 0 : i32
    %c0_i32_0 = arith.constant 0 : i32
    %c0_i32_1 = arith.constant 0 : i32
    return %c0_i32, %c0_i32_0 : i32, i32
  }
  func.func @transform_2(%arg0: i32) -> (i32, i32) {
    %c0_i32 = arith.constant 0 : i32
    %c0_i32_0 = arith.constant 0 : i32
    %c0_i32_1 = arith.constant 0 : i32
    return %c0_i32, %c0_i32_0 : i32, i32
  }
  func.func @transform_3(%arg0: i32) -> (i32, i32) {
    %c0_i32 = arith.constant 0 : i32
    %c0_i32_0 = arith.constant 0 : i32
    %c0_i32_1 = arith.constant 0 : i32
    return %c0_i32, %c0_i32_0 : i32, i32
  }
  func.func @transform_4(%arg0: i32) -> (i32, i32) {
    %c0_i32 = arith.constant 0 : i32
    %c0_i32_0 = arith.constant 0 : i32
    %c0_i32_1 = arith.constant 0 : i32
    return %c0_i32, %c0_i32_0 : i32, i32
  }
  func.func @transform_5(%arg0: i32) -> (i32, i32) {
    %c0_i32 = arith.constant 0 : i32
    %c0_i32_0 = arith.constant 0 : i32
    %c0_i32_1 = arith.constant 0 : i32
    return %c0_i32, %c0_i32_0 : i32, i32
  }
  func.func @transform_6(%arg0: i32) -> (i32, i32) {
    %c0_i32 = arith.constant 0 : i32
    %c0_i32_0 = arith.constant 0 : i32
    return %arg0, %c0_i32 : i32, i32
  }
}

</mosaic_0001>

<bundles_post_ra>
// kernel: rff_block.1
= control target key start
LH: loop header
LB: loop body
LE: loop exit
PB: predicated region body
PF: predicated region fallthrough
CT: control target
= control target key end

     0   :  { %11 = vsyncpa [#allocation3], 0  ;;  %s697_s0 = inlined_call_operand.vmem [shape: f32[8,1], index: 0, kind: input, shape index: {}]   ;;  %s698_s1 = inlined_call_operand.vmem [shape: f32[1,32], index: 1, kind: input, shape index: {}]   ;;  %s699_s2 = inlined_call_operand.hbm [shape: f32[64,64], index: 2, kind: input, shape index: {}]   ;;  %s700_s3 = inlined_call_operand.vmem [shape: f32[1,64], index: 3, kind: input, shape index: {}]   ;;  %s701_s4 = inlined_call_operand.hbm [shape: f32[64,128], index: 4, kind: input, shape index: {}]   ;;  %s702_s5 = inlined_call_operand.vmem [shape: f32[1,128], index: 5, kind: input, shape index: {}]   ;;  %s703_s6 = inlined_call_operand.hbm [shape: f32[8,128], index: 6, kind: output, shape index: {}]  }
   0x1   :  { %12 = vsyncpa [#allocation6], 0 }
   0x2   :  { %13 = vsyncpa [#allocation4], 0  ;;  %s22_s23 = sshll.u32 %s699_s2, 4  ;;  %s577_s24 = smov [#allocation2]   ;;  %s23_s23 = int_to_ptr.hbm [resolvable:$true] %s22_s23 }
   0x3   :  { %s24_s25 = sshll.u32 %s577_s24, 4  ;;  %s37_s28 = sshll.u32 %s701_s4, 4  ;;  %s25_s25 = int_to_ptr.vmem [resolvable:$true] %s24_s25  ;;  %s38_s28 = int_to_ptr.hbm [resolvable:$true] %s37_s28 }
   0x4   :  { %s578_s29 = smov 128   ;;  %s579_s30 = smov 8  }
   0x5   :  { %30 = dma.hbm_to_vmem [thread:$0]  %s23_s23, 1024, %s25_s25, [#allocation3], %s578_s29, %s578_s29, %s579_s30  }
   0x6   :  { %s580_s7 = smov [#allocation5]  }
   0x7   :  { %s39_s8 = sshll.u32 %s580_s7, 4  ;;  %s40_s8 = int_to_ptr.vmem [resolvable:$true] %s39_s8 }
   0x8   :  { %45 = dma.hbm_to_vmem [thread:$0]  %s38_s28, 1024, %s40_s8, [#allocation6], %s578_s29, %s578_s29, %s579_s30  }
   0x9   :  { %571 = dma.done.wait [#allocation3], 1024  }
   0xa   :  { %572 = vsyncadd [#allocation3], 4294966272 }
   0xb   :  { %573 = dma.done.wait [#allocation6], 1024  }
   0xc   :  { %574 = vsyncadd [#allocation6], 4294966272  ;;  %v581_v0 = vmov 0   ;;  %v56_v1 = vld [vmem:[%s697_s0] sm:$0xff]  ;;  %v582_v16 = vmov 683565275  }
   0xd   :  { %495 = vset.pattern.permute.xlu0 %v581_v0  ;;  %v496_v2 = vld [vmem:[%s698_s1] ss:$0 sm:$0xff]  ;;  %v583_v18 = vmov 2475754826   ;;  %v584_v20 = vmov 2131351028  }
   0xe   :  { %60 = vperm.xlu0 %495, %v56_v1   ;;  %v585_v22 = vmov 2102212464   ;;  %v586_v27 = vmov 920167782   ;;  %v587_v30 = vmov 1326507024  }
   0xf   :  { %s588_s0 = smov 32   ;;  %s589_s14 = smov [#allocation7]  }
  0x10   :  { %s461_s15 = sshll.u32 %s589_s14, 4  ;;  %s463_s18 = sshll.u32 %s703_s6, 4  ;;  %s462_s15 = int_to_ptr.vmem [resolvable:$true] %s461_s15  ;;  %s464_s18 = int_to_ptr.hbm [resolvable:$true] %s463_s18 }
  0x80   :  { %v61_v3 = vpop.permute.xlu0 %60 }
  0x81   :  { %v638_v4 = vmul.f32 %v496_v2, %v61_v3 }
  0x83   :  { %v70_v5 = vand.u32 2139095040, %v638_v4  ;;  %v67_v7 = vand.u32 2147483647, %v638_v4  ;;  %vm69_vm12 = vcmp.lt.s32.totalorder %v638_v4, 0 }
  0x85   :  { %v71_v6 = vshrl.u32 %v70_v5, 23  ;;  %v74_v10 = vand.u32 8388607, %v67_v7  ;;  %vm68_vm13 = vcmp.le.f32.partialorder %v67_v7, 0.7853982 }
  0x87   :  { %v474_v8 = vadd.s32 4294967169, %v71_v6  ;;  %v75_v13 = vor.u32 8388608, %v74_v10 }
  0x89   :  { %v77_v9 = vadd.s32 1, %v474_v8  ;;  %v646_v32 = vshll.u32 %v75_v13, 8 }
  0x8b   :  { %vm78_vm0 = vcmp.gt.s32.totalorder %v77_v9, 0  ;;  %v116_v44 = vand.u32 65535, %v646_v32  ;;  %v117_v46 = vshrl.u32 %v646_v32, 16 }
  0x8c   :  { %v79_v11 = vsel %vm78_vm0, %v77_v9, 0 }
  0x8d   :  { %v81_v12 = vand.u32 31, %v79_v11  ;;  %v644_v14 = vshrl.u32 %v79_v11, 5 }
  0x8f   :  { %v82_v15 = vsub.s32 32, %v81_v12  ;;  %v84_v17 = vshll.u32 %v582_v16, %v81_v12  ;;  %v87_v19 = vshll.u32 %v583_v18, %v81_v12  ;;  %v90_v21 = vshll.u32 %v584_v20, %v81_v12 }
  0x90   :  { %v93_v23 = vshll.u32 %v585_v22, %v81_v12  ;;  %v96_v29 = vshll.u32 %v586_v27, %v81_v12  ;;  %vm99_vm1 = vcmp.lt.s32.totalorder %v644_v14, 1  ;;  %vm102_vm2 = vcmp.lt.s32.totalorder %v644_v14, 4 }
  0x91   :  { %v85_v24 = vshrl.u32 %v583_v18, %v82_v15  ;;  %v88_v25 = vshrl.u32 %v584_v20, %v82_v15  ;;  %v91_v26 = vshrl.u32 %v585_v22, %v82_v15  ;;  %v94_v28 = vshrl.u32 %v586_v27, %v82_v15 }
  0x92   :  { %v97_v31 = vshrl.u32 %v587_v30, %v82_v15  ;;  %vm101_vm3 = vcmp.lt.s32.totalorder %v644_v14, 3  ;;  %vm100_vm4 = vcmp.lt.s32.totalorder %v644_v14, 2  ;;  %v83_v9 = vshrl.u32 %v582_v16, %v82_v15 }
  0x93   :  { %v86_v33 = vor.u32 %v85_v24, %v84_v17  ;;  %v89_v34 = vor.u32 %v88_v25, %v87_v19  ;;  %v92_v35 = vor.u32 %v91_v26, %v90_v21  ;;  %v95_v36 = vor.u32 %v94_v28, %v93_v23 }
  0x94   :  { %v98_v37 = vor.u32 %v97_v31, %v96_v29 }
  0x95   :  { %v107_v38 = vsel %vm99_vm1, %v86_v33, %v89_v34  ;;  %v108_v39 = vsel %vm102_vm2, %v95_v36, 920167782  ;;  %v111_v40 = vsel %vm99_vm1, %v89_v34, %v92_v35  ;;  %v104_v5 = vsel %vm102_vm2, %v92_v35, 2102212464 }
  0x96   :  { %v109_v41 = vsel %vm101_vm3, %v92_v35, %v108_v39  ;;  %v112_v42 = vsel %vm102_vm2, %v98_v37, 1326507024  ;;  %v103_v18 = vsel %vm99_vm1, %v83_v9, %v86_v33  ;;  %v105_v19 = vsel %vm101_vm3, %v89_v34, %v104_v5 }
  0x97   :  { %v113_v43 = vsel %vm101_vm3, %v95_v36, %v112_v42  ;;  %v110_v45 = vsel %vm100_vm4, %v107_v38, %v109_v41  ;;  %v106_v16 = vsel %vm100_vm4, %v103_v18, %v105_v19 }
  0x98   :  { %v114_v47 = vsel %vm100_vm4, %v111_v40, %v113_v43  ;;  %v140_v48 = vand.u32 65535, %v110_v45  ;;  %v141_v49 = vshrl.u32 %v110_v45, 16  ;;  %v160_v28 = vmul.u32 %v646_v32, %v106_v16 }
  0x99   :  { %v118_v50 = vand.u32 65535, %v114_v47  ;;  %v119_v51 = vshrl.u32 %v114_v47, 16  ;;  %v389_v47 = vld [vmem:[#allocation2 + $0x38] sm:$0xff]  ;;  %vm210_vm4 = vweird.f32 %v638_v4 }
  0x9a   :  { %v143_v52 = vmul.u32 %v141_v49, %v116_v44  ;;  %v144_v53 = vmul.u32 %v140_v48, %v117_v46  ;;  %v142_v56 = vmul.u32 %v140_v48, %v116_v44  ;;  %v145_v60 = vmul.u32 %v141_v49, %v117_v46  ;;  %v388_v48 = vld [vmem:[#allocation2 + $0x30] sm:$0xff]  ;;  %406 = vmatpush.msra.mxu0 %v389_v47 }
  0x9b   :  { %v121_v54 = vmul.u32 %v119_v51, %v116_v44  ;;  %v122_v55 = vmul.u32 %v118_v50, %v117_v46  ;;  %v120_v58 = vmul.u32 %v118_v50, %v116_v44  ;;  %v123_v61 = vmul.u32 %v119_v51, %v117_v46  ;;  %v387_v50 = vld [vmem:[#allocation2 + $0x28] sm:$0xff] }
  0x9c   :  { %v146_v57 = vshll.u32 %v143_v52, 16  ;;  %v148_v62 = vshll.u32 %v144_v53, 16  ;;  %v147_v13 = vshrl.u32 %v143_v52, 16  ;;  %v149_v22 = vshrl.u32 %v144_v53, 16  ;;  %407 = vmatpush.msra.mxu0 %v388_v48  ;;  %v386_v53 = vld [vmem:[#allocation2 + $0x20] sm:$0xff] }
  0x9d   :  { %v124_v59 = vshll.u32 %v121_v54, 16  ;;  %v126_v1 = vshll.u32 %v122_v55, 16  ;;  %v125_v20 = vshrl.u32 %v121_v54, 16  ;;  %v127_v24 = vshrl.u32 %v122_v55, 16  ;;  %v385_v55 = vld [vmem:[#allocation2 + $0x18] sm:$0xff] }
  0x9e   :  { %vm150_vm5 = vc.u32 %v142_v56, %v146_v57  ;;  %v152_v63 = vadd.s32 %v146_v57, %v142_v56  ;;  %408 = vmatpush.msra.mxu0 %v387_v50 }
  0x9f   :  { %vm128_vm6 = vc.u32 %v120_v58, %v124_v59  ;;  %v130_v2 = vadd.s32 %v124_v59, %v120_v58  ;;  %v151_v3 = vsel %vm150_vm5, 1, %v581_v0  ;;  %v384_v58 = vld [vmem:[#allocation2 + $0x10] sm:$0xff]  ;;  %vm380_vm5 = vcmask 261120  }
  0xa0   :  { %v129_v6 = vsel %vm128_vm6, 1, %v581_v0  ;;  %v153_v8 = vadd.s32 %v151_v3, %v145_v60  ;;  %vm154_vm7 = vc.u32 %v152_v63, %v148_v62  ;;  %409 = vmatpush.msra.mxu0 %v386_v53  ;;  %vm394_vm6 = vcmask 523264  }
  0xa1   :  { %v131_v10 = vadd.s32 %v129_v6, %v123_v61  ;;  %vm132_vm8 = vc.u32 %v130_v2, %v126_v1  ;;  %v155_v11 = vsel %vm154_vm7, 1, %v581_v0  ;;  %v383_v61 = vld [vmem:[#allocation2 + $0x8] sm:$0xff] }
  0xa2   :  { %v133_v12 = vsel %vm132_vm8, 1, %v581_v0  ;;  %v157_v17 = vadd.s32 %v155_v11, %v153_v8  ;;  %v156_v0 = vadd.s32 %v152_v63, %v148_v62  ;;  %410 = vmatpush.msra.mxu0 %v385_v55 }
  0xa3   :  { %v135_v21 = vadd.s32 %v133_v12, %v131_v10 }
  0xa4   :  { %v158_v23 = vadd.s32 %v157_v17, %v147_v13  ;;  %411 = vmatpush.msra.mxu0 %v384_v58 }
  0xa5   :  { %v136_v15 = vadd.s32 %v135_v21, %v125_v20 }
  0xa6   :  { %v159_v25 = vadd.s32 %v158_v23, %v149_v22  ;;  %412 = vmatpush.msra.mxu0 %v383_v61 }
  0xa7   :  { %v137_v26 = vadd.s32 %v136_v15, %v127_v24 }
  0xa8   :  { %v163_v27 = vadd.s32 1, %v159_v25 }
  0xa9   :  { %vm162_vm9 = vc.u32 %v137_v26, %v156_v0  ;;  %v161_v40 = vadd.s32 %v156_v0, %v137_v26 }
  0xaa   :  { %v164_v29 = vsel %vm162_vm9, %v163_v27, %v159_v25 }
  0xab   :  { %v165_v30 = vadd.s32 %v164_v29, %v160_v28  ;;  %v382_v29 = vld [vmem:[#allocation2] sm:$0xff] }
  0xac   :  { %413 = vmatpush.msra.mxu0 %v382_v29 }
  0xad   :  { %v166_v31 = vadd.s32 536870912, %v165_v30 }
  0xaf   :  { %v167_v33 = vshrl.u32 %v166_v31, 30  ;;  %v425_v31 = vld [vmem:[#allocation5 + $0x30] sm:$0xff] }
  0xb1   :  { %v168_v34 = vshll.u32 %v167_v33, 30  ;;  %v191_v57 = vsub.s32 4, %v167_v33 }
  0xb3   :  { %v169_v35 = vsub.s32 %v165_v30, %v168_v34  ;;  %v192_v63 = vsel %vm69_vm12, %v191_v57, %v167_v33  ;;  %v426_v30 = vld [vmem:[#allocation5 + $0x38] sm:$0xff]  ;;  %v424_v33 = vld [vmem:[#allocation5 + $0x28] sm:$0xff]  ;;  %v423_v34 = vld [vmem:[#allocation5 + $0x20] sm:$0xff] }
  0xb4   :  { %v194_v3 = vsel %vm68_vm13, 0, %v192_v63  ;;  %442 = vmatpush.msra.mxu1 %v426_v30 }
  0xb5   :  { %vm170_vm10 = vcmp.lt.s32.totalorder %v169_v35, 0  ;;  %v171_v36 = vsub.s32 0, %v169_v35  ;;  %v211_v10 = vadd.s32 3, %v194_v3  ;;  %v366_v20 = vand.u32 3, %v194_v3 }
  0xb6   :  { %443 = vmatpush.msra.mxu1 %v425_v31 }
  0xb7   :  { %v172_v37 = vsel %vm170_vm10, %v171_v36, %v169_v35  ;;  %v212_v17 = vand.u32 3, %v211_v10  ;;  %vm367_vm0 = vcmp.lt.s32.totalorder %v366_v20, 2  ;;  %vm368_vm1 = vcmp.eq.s32.totalorder %v366_v20, 0 }
  0xb8   :  { %v173_v38 = vclz %v172_v37  ;;  %vm371_vm2 = vcmp.eq.s32.totalorder %v366_v20, 2  ;;  %444 = vmatpush.msra.mxu1 %v424_v33  ;;  %v421_v37 = vld [vmem:[#allocation5 + $0x10] sm:$0xff] }
  0xb9   :  { %vm217_vm14 = vcmp.eq.s32.totalorder %v212_v17, 2  ;;  %vm214_vm15 = vcmp.eq.s32.totalorder %v212_v17, 0  ;;  %vm213_vm3 = vcmp.lt.s32.totalorder %v212_v17, 2 }
  0xba   :  { %v475_v39 = vadd.s32 4294967294, %v173_v38  ;;  %445 = vmatpush.msra.mxu1 %v423_v34  ;;  %v420_v38 = vld [vmem:[#allocation5 + $0x8] sm:$0xff] }
  0xbc   :  { %vm476_vm11 = vcmp.lt.s32.totalorder %v475_v39, 0 }
  0xbd   :  { %v176_v14 = vsel %vm476_vm11, 0, %v475_v39  ;;  %v419_v39 = vld [vmem:[#allocation5] sm:$0xff] }
  0xbe   :  { %v177_v41 = vsub.s32 32, %v176_v14  ;;  %v181_v42 = vsub.s32 4294967266, %v176_v14  ;;  %v178_v43 = vshll.u32 %v169_v35, %v176_v14  ;;  %v422_v35 = vld [vmem:[#allocation5 + $0x18] sm:$0xff]  ;;  %v497_v14 = vld [vmem:[%s700_s3] ss:$0 sm:$0xff] }
  0xbf   :  { %446 = vmatpush.msra.mxu1 %v422_v35 }
  0xc0   :  { %v179_v44 = vshrl.u32 %v161_v40, %v177_v41  ;;  %v182_v32 = vadd.s32 127, %v181_v42 }
  0xc1   :  { %447 = vmatpush.msra.mxu1 %v421_v37 }
  0xc2   :  { %v180_v45 = vor.u32 %v179_v44, %v178_v43  ;;  %v183_v46 = vshll.u32 %v182_v32, 23  ;;  %v498_v43 = vld [vmem:[%s702_s5] ss:$0 sm:$0xff] }
  0xc3   :  { %448 = vmatpush.msra.mxu1 %v420_v38 }
  0xc4   :  { %v184_v49 = vor.u32 4788187, %v183_v46  ;;  %v187_v52 = vcvt.s32.f32 %v180_v45 }
  0xc5   :  { %449 = vmatpush.msra.mxu1 %v419_v39 }
  0xc6   :  { %v185_v51 = vand.u32 2147483647, %v184_v49 }
  0xc8   :  { %v188_v54 = vmul.f32 %v187_v52, %v185_v51 }
  0xca   :  { %v189_v56 = vxor.u32 2147483648, %v188_v54 }
  0xcc   :  { %v190_v59 = vsel %vm69_vm12, %v189_v56, %v188_v54 }
  0xcd   :  { %v193_v60 = vsel %vm68_vm13, %v638_v4, %v190_v59 }
  0xce   :  { %v195_v62 = vmul.f32 %v193_v60, %v193_v60 }
  0xd0   :  { %v196_v1 = vmul.f32 -0.001358992, %v195_v62  ;;  %v203_v2 = vmul.f32 -0.00019511016, %v195_v62 }
  0xd2   :  { %v197_v5 = vadd.f32 0.041655596, %v196_v1  ;;  %v204_v6 = vadd.f32 0.008332121, %v203_v2 }
  0xd4   :  { %v198_v8 = vmul.f32 %v197_v5, %v195_v62  ;;  %v205_v9 = vmul.f32 %v204_v6, %v195_v62 }
  0xd6   :  { %v199_v11 = vadd.f32 -0.4999988, %v198_v8  ;;  %v206_v12 = vadd.f32 -0.16666654, %v205_v9 }
  0xd8   :  { %v200_v7 = vmul.f32 %v199_v11, %v195_v62  ;;  %v207_v13 = vmul.f32 %v206_v12, %v195_v62 }
  0xda   :  { %v201_v18 = vadd.f32 1.0, %v200_v7  ;;  %v208_v19 = vadd.f32 1.0, %v207_v13 }
  0xdc   :  { %v209_v21 = vmul.f32 %v208_v19, %v193_v60  ;;  %v218_v22 = vxor.u32 2147483648, %v201_v18 }
  0xde   :  { %v215_v23 = vxor.u32 2147483648, %v209_v21  ;;  %v219_v24 = vsel %vm217_vm14, %v218_v22, %v209_v21  ;;  %v373_v16 = vsel %vm371_vm2, %v218_v22, %v209_v21 }
  0xe0   :  { %v370_v15 = vsel %vm368_vm1, %v201_v18, %v215_v23  ;;  %v216_v25 = vsel %vm214_vm15, %v201_v18, %v215_v23 }
  0xe1   :  { %v374_v26 = vsel %vm367_vm0, %v370_v15, %v373_v16  ;;  %v220_v0 = vsel %vm213_vm3, %v216_v25, %v219_v24 }
  0xe2   :  { %v375_v27 = vsel %vm210_vm4, nan, %v374_v26  ;;  %v221_v28 = vsel %vm210_vm4, nan, %v220_v0 }
  0xe3   :  { %377 = vrot.lane.b32.xlu0 %v375_v27, %s588_s0 }
 0x155   :  { %v378_v4 = vpop.permute.xlu0 %377 }
 0x156   :  { %v381_v36 = vsel %vm380_vm5, %v221_v28, %v378_v4 }
 0x157   :  { %480 = vmatmul.msk.f32.vlgmr.msra.gmra.mxu0 %vm394_vm6, %v381_v36 }
 0x1d4   :  { %v415_v40 = vpop.f32.mrf.mxu0 }
 0x1d5   :  { %v416_v41 = vadd.f32 %v497_v14, %v415_v40 }
 0x1d7   :  { %v418_v42 = vmax.f32 %v416_v41, 0.0 }
 0x1d9   :  { %481 = vmatmul.msk.f32.vlgmr.msra.gmra.mxu1 %vm394_vm6, %v418_v42 }
 0x256   :  { %v451_v44 = vpop.f32.mrf.mxu1 }
 0x257   :  { %v452_v32 = vadd.f32 %v498_v43, %v451_v44 }
 0x259   :  { %v454_v45 = vmax.f32 %v452_v32, 0.0 }
 0x25b   :  { %455 = vst [vmem:[#allocation7] sm:$0xff] %v454_v45 }
 0x25c   :  { %466 = dma.vmem_to_hbm [thread:$0]  %s462_s15, 128, %s464_s18, [#allocation4]  }
 0x25d   :  { %575 = dma.done.wait [#allocation4], 128  }
 0x25e   :  { %576 = vsyncadd [#allocation4], 4294967168 }
 0x25f   :  { %471 = vsyncpa [#allocation3], 1 }
 0x260   :  { %472 = vsyncpa [#allocation6], 1 }
 0x261   :  { %473 = vsyncpa [#allocation4], 1 }

</bundles_post_ra>
